<compile_context>
chip_gen: v6e
topology: v6e:2x2x1
jax: 0.10.0
libtpu: 0.0.40
codegen_flags: <defaults>
</compile_context>

<pallas_src>
import jax
import jax.numpy as jnp
from jax import lax
from jax.experimental import pallas as pl
from jax.experimental.pallas import tpu as pltpu


_LANES = 128           # lane-dense column width
_MAX_BLOCK_ROWS = 8192  # 8192 x 128 x 4 B = 4 MiB per f32 input per block


def _make_partial_kernel(total_rows, block_rows, needs_row_mask):
    """Builds the per-block partial-sum kernel (static config via closure)."""

    def kernel(pred_ref, targ_ref, mask_ref, num_ref, den_ref):
        # Native-dtype loads, promoted to f32 per block (accumulation accuracy
        # is unchanged; HBM traffic is whatever dtype the caller provided).
        pred = pred_ref[...].astype(jnp.float32)
        targ = targ_ref[...].astype(jnp.float32)
        m = mask_ref[...].astype(jnp.float32)

        if needs_row_mask:
            # Ragged last block: rows beyond `total_rows` contain garbage
            # (no wrapper-side padding) -> force their mask to 0 so they
            # contribute to neither the numerator nor the denominator.
            i = pl.program_id(0)
            valid_rows = total_rows - i * block_rows
            row_ids = lax.broadcasted_iota(jnp.int32, m.shape, 0)
            m = jnp.where(row_ids < valid_rows, m, 0.0)

        res = jnp.abs(pred - targ)
        # compare+select (not res * m) preserves res[mask.bool()] semantics
        # for non-binary masks, and shields against garbage/NaN residuals in
        # masked-off positions.
        masked_res = jnp.where(m != 0.0, res, 0.0)

        # Direct per-block partial stores (no zeros_like + add broadcast).
        num_ref[...] = jnp.full(num_ref.shape, jnp.sum(masked_res), jnp.float32)
        den_ref[...] = jnp.full(den_ref.shape, jnp.sum(m), jnp.float32)

    return kernel


def trimmed_mae_loss(prediction, target, mask, trim=0.2, *,
                     max_block_rows=_MAX_BLOCK_ROWS, core_parallel=False):
    """Pallas TPU implementation of TrimmedMAELoss.forward."""
    del trim  # no-op in the reference implementation (tuple-slicing bug)

    # Keep the mask narrow end-to-end; bool -> int8 only to sidestep i1 block
    # layout quirks (still 1 B/elem).  No f32 upcast in the wrapper.
    if mask.dtype == jnp.bool_:
        mask = mask.astype(jnp.int8)

    n = prediction.size
    C = _LANES

    def to2d(x):
        flat = x.reshape(-1)                # contiguous reshape: free
        if n % C:
            # Rare fallback (element count not a multiple of 128).  Zero-padded
            # mask elements contribute nothing to numerator or denominator.
            flat = jnp.pad(flat, (0, C - n % C))
        return flat.reshape(-1, C)          # free once lane-aligned

    pred2d = to2d(prediction)
    targ2d = to2d(target)
    mask2d = to2d(mask)

    rows = pred2d.shape[0]
    if rows <= max_block_rows:
        block_rows = rows                   # whole array in one (legal) block
    else:
        block_rows = max(8, (max_block_rows // 8) * 8)
    num_blocks = -(-rows // block_rows)
    needs_row_mask = (rows % block_rows) != 0

    kernel = _make_partial_kernel(rows, block_rows, needs_row_mask)

    in_spec = pl.BlockSpec((block_rows, C), lambda i: (i, 0))
    # 3-D (num_blocks, 1, 1) partials: the blocked grid axis is the leading
    # dim, so the last two block dims equal the full array dims (always legal).
    out_spec = pl.BlockSpec((1, 1, 1), lambda i: (i, 0, 0))

    semantics = pltpu.CORE_PARALLEL if core_parallel else "parallel"

    num_parts, den_parts = pl.pallas_call(
        kernel,
        out_shape=(
            jax.ShapeDtypeStruct((num_blocks, 1, 1), jnp.float32),
            jax.ShapeDtypeStruct((num_blocks, 1, 1), jnp.float32),
        ),
        grid=(num_blocks,),
        in_specs=[in_spec, in_spec, in_spec],
        out_specs=(out_spec, out_spec),
        compiler_params=pltpu.CompilerParams(
            dimension_semantics=(semantics,),
            vmem_limit_bytes=40 << 20,
        ),
    )(pred2d, targ2d, mask2d)

    num = jnp.sum(num_parts)
    den = jnp.sum(den_parts)
    # Division by an all-zero mask yields inf/nan, matching the PyTorch forward
    # (which does not call the guarded reduction_batch_based helper).
    return num / (2.0 * den)


def _reference(prediction, target, mask):
    # Pure-JAX reference of the exact PyTorch forward behavior.
    p = prediction.astype(jnp.float32)
    t = target.astype(jnp.float32)
    m = mask.astype(jnp.float32)
    res = jnp.abs(p - t)
    num = jnp.sum(jnp.where(m != 0.0, res, 0.0))
    return num / (2.0 * jnp.sum(m))


if __name__ == "__main__":
    key = jax.random.PRNGKey(0)
    k1, k2, k3, k4, k5, k6 = jax.random.split(key, 6)

    # Primary example: B=2, H=16, W=16, f32 inputs (typical module usage).
    B, H, W = 2, 16, 16
    prediction = jax.random.normal(k1, (B, H, W), dtype=jnp.float32)
    target = jax.random.normal(k2, (B, H, W), dtype=jnp.float32)
    mask = jax.random.bernoulli(k3, p=0.7, shape=(B, H, W)).astype(jnp.float32)

    out = trimmed_mae_loss(prediction, target, mask, trim=0.2)
    out = jax.block_until_ready(out)
    ref = _reference(prediction, target, mask)
    assert jnp.allclose(out, ref, rtol=1e-5, atol=1e-6), (out, ref)

    # Narrow-dtype path: bf16 prediction/target + int8 mask, no wrapper upcast.
    out2 = trimmed_mae_loss(prediction.astype(jnp.bfloat16),
                            target.astype(jnp.bfloat16),
                            mask.astype(jnp.int8))
    out2 = jax.block_until_ready(out2)
    ref2 = _reference(prediction.astype(jnp.bfloat16),
                      target.astype(jnp.bfloat16),
                      mask.astype(jnp.int8))
    assert jnp.allclose(out2, ref2, rtol=1e-3, atol=1e-3), (out2, ref2)

    # Ragged / multi-block path: lane-tail pad + in-kernel partial-block
    # row masking (small max_block_rows forces 2 grid steps).
    shp = (3, 17, 23)
    p3 = jax.random.normal(k4, shp, dtype=jnp.float32)
    t3 = jax.random.normal(k5, shp, dtype=jnp.float32)
    m3 = jax.random.bernoulli(k6, p=0.6, shape=shp).astype(jnp.float32)
    out3 = jax.block_until_ready(trimmed_mae_loss(p3, t3, m3, max_block_rows=8))
    ref3 = _reference(p3, t3, m3)
    assert jnp.allclose(out3, ref3, rtol=1e-5, atol=1e-6), (out3, ref3)

    print("KERNEL_OK")
</pallas_src>

<mosaic_0001>
module attributes {stable_mosaic.version = 11 : i64} {
  func.func @kernel(%arg0: i32, %arg1: memref<4x128xf32, #tpu.memory_space<vmem>>, %arg2: memref<4x128xf32, #tpu.memory_space<vmem>>, %arg3: memref<4x128xf32, #tpu.memory_space<vmem>>, %arg4: memref<1x1x1xf32, #tpu.memory_space<vmem>>, %arg5: memref<1x1x1xf32, #tpu.memory_space<vmem>>) attributes {dimension_semantics = [#tpu.dimension_semantics<parallel>], iteration_bounds = array<i64: 1>, scalar_prefetch = 0 : i64, scratch_operands = 0 : i64, tpu.core_type = #tpu.core_type<tc>, window_params = [{transform_indices = @transform_0, window_bounds = array<i64: 4, 128>}, {transform_indices = @transform_1, window_bounds = array<i64: 4, 128>}, {transform_indices = @transform_2, window_bounds = array<i64: 4, 128>}, {transform_indices = @transform_3, window_bounds = array<i64: 1, 1, 1>}, {transform_indices = @transform_4, window_bounds = array<i64: 1, 1, 1>}]} {
    %c0 = arith.constant 0 : index
    %c0_0 = arith.constant 0 : index
    %0 = vector.load %arg1[%c0, %c0_0] : memref<4x128xf32, #tpu.memory_space<vmem>>, vector<4x128xf32>
    %c0_1 = arith.constant 0 : index
    %c0_2 = arith.constant 0 : index
    %1 = vector.load %arg2[%c0_1, %c0_2] : memref<4x128xf32, #tpu.memory_space<vmem>>, vector<4x128xf32>
    %c0_3 = arith.constant 0 : index
    %c0_4 = arith.constant 0 : index
    %2 = vector.load %arg3[%c0_3, %c0_4] : memref<4x128xf32, #tpu.memory_space<vmem>>, vector<4x128xf32>
    %3 = arith.subf %0, %1 : vector<4x128xf32>
    %4 = math.absf %3 : vector<4x128xf32>
    %cst = arith.constant 0.000000e+00 : f32
    %5 = vector.broadcast %cst : f32 to vector<4x128xf32>
    %6 = arith.cmpf one, %2, %5 : vector<4x128xf32>
    %cst_5 = arith.constant 0.000000e+00 : f32
    %7 = vector.broadcast %cst_5 : f32 to vector<4x128xf32>
    %8 = arith.select %6, %4, %7 : vector<4x128xi1>, vector<4x128xf32>
    %9 = vector.shape_cast %8 : vector<4x128xf32> to vector<1x4x128xf32>
    %cst_6 = arith.constant dense<0.000000e+00> : vector<1xf32>
    %10 = vector.multi_reduction <add>, %9, %cst_6 [1, 2] : vector<1x4x128xf32> to vector<1xf32>
    %11 = vector.shape_cast %10 : vector<1xf32> to vector<1x1x1xf32>
    %12 = vector.extract %11[0, 0, 0] : f32 from vector<1x1x1xf32>
    %13 = vector.broadcast %12 : f32 to vector<1x1x1xf32>
    %c0_7 = arith.constant 0 : index
    %c0_8 = arith.constant 0 : index
    %c0_9 = arith.constant 0 : index
    %14 = vector.load %arg4[%c0_7, %c0_8, %c0_9] : memref<1x1x1xf32, #tpu.memory_space<vmem>>, vector<1x1x1xf32>
    tpu.vector_store %arg4[%c0_7, %c0_8, %c0_9], %13 {strides = array<i32>} : memref<1x1x1xf32, #tpu.memory_space<vmem>>, vector<1x1x1xf32>,
    %15 = vector.shape_cast %2 : vector<4x128xf32> to vector<1x4x128xf32>
    %cst_10 = arith.constant dense<0.000000e+00> : vector<1xf32>
    %16 = vector.multi_reduction <add>, %15, %cst_10 [1, 2] : vector<1x4x128xf32> to vector<1xf32>
    %17 = vector.shape_cast %16 : vector<1xf32> to vector<1x1x1xf32>
    %18 = vector.extract %17[0, 0, 0] : f32 from vector<1x1x1xf32>
    %19 = vector.broadcast %18 : f32 to vector<1x1x1xf32>
    %c0_11 = arith.constant 0 : index
    %c0_12 = arith.constant 0 : index
    %c0_13 = arith.constant 0 : index
    %20 = vector.load %arg5[%c0_11, %c0_12, %c0_13] : memref<1x1x1xf32, #tpu.memory_space<vmem>>, vector<1x1x1xf32>
    tpu.vector_store %arg5[%c0_11, %c0_12, %c0_13], %19 {strides = array<i32>} : memref<1x1x1xf32, #tpu.memory_space<vmem>>, vector<1x1x1xf32>,
    return
  }
  func.func @transform_0(%arg0: i32) -> (i32, i32) {
    %c0_i32 = arith.constant 0 : i32
    %c0_i32_0 = arith.constant 0 : i32
    return %arg0, %c0_i32 : i32, i32
  }
  func.func @transform_1(%arg0: i32) -> (i32, i32) {
    %c0_i32 = arith.constant 0 : i32
    %c0_i32_0 = arith.constant 0 : i32
    return %arg0, %c0_i32 : i32, i32
  }
  func.func @transform_2(%arg0: i32) -> (i32, i32) {
    %c0_i32 = arith.constant 0 : i32
    %c0_i32_0 = arith.constant 0 : i32
    return %arg0, %c0_i32 : i32, i32
  }
  func.func @transform_3(%arg0: i32) -> (i32, i32, i32) {
    %c0_i32 = arith.constant 0 : i32
    %c0_i32_0 = arith.constant 0 : i32
    %c0_i32_1 = arith.constant 0 : i32
    return %arg0, %c0_i32, %c0_i32_0 : i32, i32, i32
  }
  func.func @transform_4(%arg0: i32) -> (i32, i32, i32) {
    %c0_i32 = arith.constant 0 : i32
    %c0_i32_0 = arith.constant 0 : i32
    %c0_i32_1 = arith.constant 0 : i32
    return %arg0, %c0_i32, %c0_i32_0 : i32, i32, i32
  }
}

</mosaic_0001>

<bundles_post_ra>
// kernel: tpu_custom_call.1
= control target key start
LH: loop header
LB: loop body
LE: loop exit
PB: predicated region body
PF: predicated region fallthrough
CT: control target
= control target key end

     0   :  { %10 = vsyncpa [#allocation3], 0  ;;  %s280_s0 = inlined_call_operand.hbm [shape: f32[4,128], index: 0, kind: input, shape index: {}]   ;;  %s281_s1 = inlined_call_operand.hbm [shape: f32[4,128], index: 1, kind: input, shape index: {}]   ;;  %s282_s2 = inlined_call_operand.hbm [shape: f32[4,128], index: 2, kind: input, shape index: {}]   ;;  %s283_s3 = inlined_call_operand.hbm [shape: f32[1,1,1], index: 3, kind: output, shape index: {0}]   ;;  %s284_s4 = inlined_call_operand.hbm [shape: f32[1,1,1], index: 4, kind: output, shape index: {1}]  }
   0x1   :  { %11 = vsyncpa [#allocation6], 0 }
   0x2   :  { %12 = vsyncpa [#allocation4], 0 }
   0x3   :  { %13 = vsyncpa [#allocation10], 0  ;;  %s233_s15 = smov [#allocation5]   ;;  %s234_s17 = smov [#allocation2]  }
   0x4   :  { %s30_s16 = sshll.u32 %s233_s15, 4  ;;  %s20_s18 = sshll.u32 %s234_s17, 4  ;;  %s31_s16 = int_to_ptr.vmem [resolvable:$true] %s30_s16  ;;  %s21_s18 = int_to_ptr.vmem [resolvable:$true] %s20_s18 }
   0x5   :  { %s133_s19 = scalar_lea.vmem %s31_s16, 64  ;;  %p138_p1 = scmp.lt.s32.totalorder %s31_s16, %s31_s16 }
   0x6   :  { %p134_p0 = scmp.ne.s32.totalorder %s31_s16, %s133_s19  ;;  %p139_p2 = scmp.lt.s32.totalorder %s133_s19, %s133_s19 }
   0x8   :  { %p140_p3 = por %p139_p2, %p138_p1 }
   0xa   :  { %p141_p4 = pnand %p140_p3, %p134_p0 }
   0xc   :  { %144 = shalt.err (!%p141_p4)
}
   0xd   :  { %33 = dma.hbm_to_vmem [thread:$0]  %s281_s1, 64, %s31_s16, [#allocation6]  }
   0xe   :  { %s153_s22 = scalar_lea.vmem %s21_s18, 64  ;;  %p158_p6 = scmp.lt.s32.totalorder %s21_s18, %s21_s18 }
   0xf   :  { %p154_p5 = scmp.ne.s32.totalorder %s21_s18, %s153_s22  ;;  %p159_p7 = scmp.lt.s32.totalorder %s153_s22, %s153_s22 }
  0x11   :  { %p160_p8 = por %p159_p7, %p158_p6 }
  0x13   :  { %p161_p9 = pnand %p160_p8, %p154_p5 }
  0x15   :  { %164 = shalt.err (!%p161_p9)
}
  0x16   :  { %23 = dma.hbm_to_vmem [thread:$0]  %s280_s0, 64, %s21_s18, [#allocation3]  }
  0x17   :  { %s235_s25 = smov [#allocation7]  }
  0x18   :  { %s40_s26 = sshll.u32 %s235_s25, 4  ;;  %s41_s26 = int_to_ptr.vmem [resolvable:$true] %s40_s26 }
  0x19   :  { %s173_s27 = scalar_lea.vmem %s41_s26, 64  ;;  %p178_p11 = scmp.lt.s32.totalorder %s41_s26, %s41_s26 }
  0x1a   :  { %p174_p10 = scmp.ne.s32.totalorder %s41_s26, %s173_s27  ;;  %p179_p12 = scmp.lt.s32.totalorder %s173_s27, %s173_s27 }
  0x1c   :  { %p180_p13 = por %p179_p12, %p178_p11 }
  0x1e   :  { %p181_p0 = pnand %p180_p13, %p174_p10 }
  0x20   :  { %184 = shalt.err (!%p181_p0)
}
  0x21   :  { %43 = dma.hbm_to_vmem [thread:$0]  %s282_s2, 64, %s41_s26, [#allocation6]  }
  0x22   :  { %225 = dma.done.wait [#allocation3], 64  }
  0x23   :  { %226 = vsyncadd [#allocation3], 4294967232 }
  0x24   :  { %227 = dma.done.wait [#allocation6], 128  }
  0x25   :  { %228 = vsyncadd [#allocation6], 4294967168  ;;  %v53_v0 = vld [vmem:[#allocation2] sm:$0xf]  ;;  %v54_v1 = vld [vmem:[#allocation5] sm:$0xf] }
  0x26   :  { %v55_v2 = vld [vmem:[#allocation7] sm:$0xf]  ;;  %v56_v3 = vsub.f32 %v53_v0, %v54_v1  ;;  %vm60_vm1 = vcmask 1043456   ;;  %s236_s0 = smov [#allocation8]   ;;  %vm72_vm2 = vcmask 0   ;;  %s237_s30 = smov [#allocation9]  }
  0x27   :  { %vm58_vm0 = vcmp.ne.f32.partialorder %v55_v2, 0.0  ;;  %v74_v7 = vsel %vm60_vm1, %v55_v2, 0.0  ;;  %s92_s2 = sshll.u32 %s236_s0, 4  ;;  %s102_s5 = sshll.u32 %s237_s30, 4  ;;  %s93_s2 = int_to_ptr.vmem [resolvable:$true] %s92_s2  ;;  %s103_s5 = int_to_ptr.vmem [resolvable:$true] %s102_s5 }
  0x28   :  { %v57_v4 = vand.u32 2147483647, %v56_v3  ;;  %s185_s6 = scalar_lea.vmem %s93_s2, 16  ;;  %s189_s7 = scalar_lea.vmem %s93_s2, 32 }
  0x29   :  { %p186_p1 = scmp.ne.s32.totalorder %s93_s2, %s185_s6  ;;  %p190_p2 = scmp.lt.s32.totalorder %s93_s2, %s93_s2 }
  0x2a   :  { %v59_v5 = vsel %vm58_vm0, %v57_v4, 0.0  ;;  %p191_p3 = scmp.lt.s32.totalorder %s189_s7, %s185_s6 }
  0x2b   :  { %v61_v6 = vsel %vm60_vm1, %v59_v5, 0.0 }
  0x2c   :  { %62 = vadd.xlane.f32.xlu0 %v61_v6  ;;  %p192_p4 = por %p191_p3, %p190_p2 }
  0x2e   :  { %p193_p5 = pnand %p192_p4, %p186_p1 }
  0x30   :  { %75 = vadd.xlane.f32.xlu0 %v74_v7 }
  0xb5   :  { %v63_v8 = vpop.xlane.xlu0 %62 }
  0xb6   :  { %v64_v9 = vrot.slane %v63_v8, 4 }
  0xb8   :  { %v65_v10 = vadd.f32 %v64_v9, %v63_v8 }
  0xb9   :  { %v76_v11 = vpop.xlane.xlu0 %75 }
  0xba   :  { %v66_v12 = vrot.slane %v65_v10, 2  ;;  %v77_v13 = vrot.slane %v76_v11, 4 }
  0xbc   :  { %v78_v14 = vadd.f32 %v77_v13, %v76_v11  ;;  %v67_v15 = vadd.f32 %v66_v12, %v65_v10 }
  0xbe   :  { %v79_v16 = vrot.slane %v78_v14, 2  ;;  %v68_v17 = vrot.slane %v67_v15, 1 }
  0xc0   :  { %v80_v18 = vadd.f32 %v79_v16, %v78_v14  ;;  %v69_v19 = vadd.f32 %v68_v17, %v67_v15 }
  0xc2   :  { %116 = vpush %v69_v19  ;;  %v81_v20 = vrot.slane %v80_v18, 1 }
  0xc4   :  { %v82_v21 = vadd.f32 %v81_v20, %v80_v18 }
  0xc6   :  { %118 = vpush %v82_v21 }
  0xf3   :  { %s117_s29 = spop %116 }
  0xf4   :  { %v71_v22 = vstv %s117_s29 }
  0xf5   :  { %73 = vst.msk [vmem:[#allocation8] sm:$0x1] %vm72_vm2, %v71_v22 }
  0xf6   :  { %196 = shalt.err (!%p193_p5)
}
  0xf7   :  { %95 = dma.vmem_to_hbm [thread:$0]  %s93_s2, 16, %s283_s3, [#allocation4]  }
  0xf8   :  { %s119_s10 = spop %118  ;;  %s205_s11 = scalar_lea.vmem %s103_s5, 16 }
  0xf9   :  { %v84_v23 = vstv %s119_s10  ;;  %p206_p6 = scmp.ne.s32.totalorder %s103_s5, %s205_s11  ;;  %s209_s12 = scalar_lea.vmem %s103_s5, 32 }
  0xfa   :  { %85 = vst.msk [vmem:[#allocation9] sm:$0x1] %vm72_vm2, %v84_v23  ;;  %p210_p7 = scmp.lt.s32.totalorder %s103_s5, %s103_s5  ;;  %p211_p8 = scmp.lt.s32.totalorder %s209_s12, %s205_s11 }
  0xfc   :  { %p212_p9 = por %p211_p8, %p210_p7 }
  0xfe   :  { %p213_p10 = pnand %p212_p9, %p206_p6 }
 0x100   :  { %216 = shalt.err (!%p213_p10)
}
 0x101   :  { %105 = dma.vmem_to_hbm [thread:$0]  %s103_s5, 16, %s284_s4, [#allocation10]  }
 0x102   :  { %229 = dma.done.wait [#allocation4], 16  }
 0x103   :  { %230 = vsyncadd [#allocation4], 4294967280 }
 0x104   :  { %231 = dma.done.wait [#allocation10], 16  }
 0x105   :  { %232 = vsyncadd [#allocation10], 4294967280 }
 0x106   :  { %112 = vsyncpa [#allocation3], 1 }
 0x107   :  { %113 = vsyncpa [#allocation6], 1 }
 0x108   :  { %114 = vsyncpa [#allocation4], 1 }
 0x109   :  { %115 = vsyncpa [#allocation10], 1 }

</bundles_post_ra>
